<compile_context>
chip_gen: v5e
topology: v5e:2x2
jax: 0.10.0
libtpu: 0.0.40
codegen_flags: <defaults>
</compile_context>

<pallas_src>
import jax
import jax.numpy as jnp
from jax.experimental import pallas as pl
from jax.experimental.pallas import tpu as pltpu


# ---------------------------------------------------------------------------
# Helpers
# ---------------------------------------------------------------------------
def _round_up(x, m):
    return (x + m - 1) // m * m


def _sublane(itemsize):
    # Native sublane packing: 8 rows for 4-byte, 16 for 2-byte, 32 for 1-byte.
    return {4: 8, 2: 16, 1: 32}.get(itemsize, 8)


def _vmem_budget_bytes():
    """Scoped-VMEM budget we are willing to use (and request explicitly)."""
    try:
        cap = pltpu.get_tpu_info().vmem_capacity_bytes
    except Exception:
        cap = 64 << 20  # conservative default: v7x per-TensorCore VMEM
    # Never assume more than 48 MiB (v7x physical is 64 MiB per TC).
    return min(48 << 20, (cap * 3) // 4)


def _target_tile_bytes(budget):
    # Double-buffered input + output = 4 live tiles; keep ~2x headroom.
    return max(1 << 20, budget // 8)


# ---------------------------------------------------------------------------
# Fast path: permutation expressed in the BlockSpecs, kernel is a pure copy.
# ---------------------------------------------------------------------------
def _copy_kernel(x_ref, o_ref):
    # Both refs are (bblk, cpg, hw_blk); identical VMEM layout, plain copy.
    o_ref[...] = x_ref[...]


def _shuffle_dma_permute(xv, groups, cpg, hw, budget):
    """xv: (B, groups, cpg, hw) -> (B, cpg, groups*hw), permuted via index maps."""
    B = xv.shape[0]
    itemsize = xv.dtype.itemsize
    sub = _sublane(itemsize)
    target = _target_tile_bytes(budget)
    cpg_pad = _round_up(cpg, sub)

    # hw tile: largest multiple-of-128 divisor of hw whose (padded) one-batch
    # tile fits the target.  Must divide hw so output blocks never straddle a
    # group boundary in the flattened (groups*hw) output axis.
    m = hw // 128
    divs = [v for v in range(1, m + 1) if m % v == 0]
    di = 0
    for idx, v in enumerate(divs):
        if cpg_pad * (128 * v) * itemsize <= target:
            di = idx
    hw_blk = 128 * divs[di]

    tile1 = cpg_pad * hw_blk * itemsize            # padded bytes per batch row
    bblk = max(1, min(B, target // tile1))

    def n_steps(bb, hb):
        return pl.cdiv(B, bb) * groups * (hw // hb)

    # Prefer >= 4 grid steps: pipeline overlap + work for both v7x TensorCores.
    while n_steps(bblk, hw_blk) < 4 and bblk > 1:
        bblk = (bblk + 1) // 2
    while n_steps(bblk, hw_blk) < 4 and di > 0:
        di -= 1
        hw_blk = 128 * divs[di]

    nb = pl.cdiv(B, bblk)
    nhw = hw // hw_blk

    return pl.pallas_call(
        _copy_kernel,
        out_shape=jax.ShapeDtypeStruct((B, cpg, groups * hw), xv.dtype),
        grid_spec=pltpu.PrefetchScalarGridSpec(
            num_scalar_prefetch=0,
            grid=(nb, groups, nhw),
            in_specs=[
                pl.BlockSpec(
                    (bblk, pl.Squeezed(), cpg, hw_blk),
                    lambda b, g, h: (b, g, 0, h),
                )
            ],
            out_specs=pl.BlockSpec(
                (bblk, cpg, hw_blk),
                # Output channel i*groups + g <- input channel g*cpg + i:
                # group g's hw-run lands at offset g*hw inside the last axis.
                lambda b, g, h: (b, 0, g * nhw + h),
            ),
        ),
        compiler_params=pltpu.CompilerParams(
            dimension_semantics=("parallel", "parallel", "parallel"),
            vmem_limit_bytes=budget,
        ),
    )(xv)


# ---------------------------------------------------------------------------
# Fallback path: contiguous slab DMAs + on-chip relayout (small / odd H*W).
# ---------------------------------------------------------------------------
def _transpose_kernel(x_ref, o_ref):
    # x_ref: (bblk, groups, cpg, hw_blk) -> o_ref: (bblk, cpg, groups, hw_blk)
    o_ref[...] = jnp.transpose(x_ref[...], (0, 2, 1, 3))


def _shuffle_contiguous(xv, groups, cpg, hw, budget):
    """xv: (B, groups, cpg, hw) -> (B, cpg, groups, hw) with in-VMEM relayout."""
    B = xv.shape[0]
    itemsize = xv.dtype.itemsize
    sub = _sublane(itemsize)
    target = _target_tile_bytes(budget)

    # Padded per-batch bytes: input tile sublane = cpg, output tile sublane =
    # groups — account for the larger of the two (review item 2).
    def per_batch(hb):
        rows = max(_round_up(cpg, sub) * groups, _round_up(groups, sub) * cpg)
        return rows * _round_up(hb, 128) * itemsize

    if hw * itemsize < 512 or hw <= 128:
        # Short per-channel runs: keep whole-hw, fully contiguous slab DMAs.
        hw_blk = hw
    else:
        hw_blk = max(128, (target // per_batch(128) * 128) // 128 * 128)
        hw_blk = min(hw_blk, hw)
        if hw_blk >= hw:
            hw_blk = hw                      # full dim (always legal)
        else:
            hw_blk = (hw_blk // 128) * 128   # multiple of 128 (edge is masked)

    bblk = max(1, min(B, target // per_batch(hw_blk)))
    # TODO(synk): if a single (batch=1, minimal-hw) tile ever exceeded the VMEM
    # budget, add channel tiling; real ShuffleNet slabs are far below that.

    nhw = pl.cdiv(hw, hw_blk)
    while pl.cdiv(B, bblk) * nhw < 2 and bblk > 1:   # keep DMA/compute overlap
        bblk = (bblk + 1) // 2
    nb = pl.cdiv(B, bblk)

    return pl.pallas_call(
        _transpose_kernel,
        out_shape=jax.ShapeDtypeStruct((B, cpg, groups, hw), xv.dtype),
        grid_spec=pltpu.PrefetchScalarGridSpec(
            num_scalar_prefetch=0,
            grid=(nb, nhw),
            in_specs=[
                pl.BlockSpec((bblk, groups, cpg, hw_blk), lambda b, h: (b, 0, 0, h))
            ],
            out_specs=pl.BlockSpec(
                (bblk, cpg, groups, hw_blk), lambda b, h: (b, 0, 0, h)
            ),
        ),
        compiler_params=pltpu.CompilerParams(
            dimension_semantics=("parallel", "parallel"),
            vmem_limit_bytes=budget,
        ),
    )(xv)


# ---------------------------------------------------------------------------
# Public API
# ---------------------------------------------------------------------------
def channel_shuffle_pallas(x: jax.Array, groups: int) -> jax.Array:
    """Channel shuffle: view (B, G, Cpg, H, W) -> transpose(1, 2) -> flatten."""
    B, C, H, W = x.shape
    if C % groups != 0:
        raise ValueError("channels must be divisible by groups")
    cpg = C // groups
    if groups == 1 or cpg == 1:
        return x  # the shuffle is the identity permutation

    hw = H * W
    xv = x.reshape(B, groups, cpg, hw)  # free view; lane axis = H*W
    budget = _vmem_budget_bytes()

    if hw % 128 == 0:
        out = _shuffle_dma_permute(xv, groups, cpg, hw, budget)
    else:
        out = _shuffle_contiguous(xv, groups, cpg, hw, budget)

    # Row-major (B, cpg, groups, hw) == torch's view/transpose/view result.
    return out.reshape(B, C, H, W)


def channel_shuffle_ref(x: jax.Array, groups: int) -> jax.Array:
    B, C, H, W = x.shape
    cpg = C // groups
    x = x.reshape(B, groups, cpg, H, W)
    x = jnp.transpose(x, (0, 2, 1, 3, 4))
    return x.reshape(B, C, H, W)


class ChannelShuffle:
    """Wrapper mirroring the PyTorch module (stores `groups`; no parameters)."""

    def __init__(self, channels: int, groups: int):
        if channels % groups != 0:
            raise ValueError("channels must be divisible by groups")
        self.groups = groups

    def __call__(self, x: jax.Array) -> jax.Array:
        return channel_shuffle_pallas(x, self.groups)


if __name__ == "__main__":
    # Primary check — DMA-permute fast path (H*W = 256 is a multiple of 128).
    key = jax.random.PRNGKey(0)
    B, C, H, W, groups = 2, 4, 16, 16, 2
    x = jax.random.normal(key, (B, C, H, W), dtype=jnp.float32)
    module = ChannelShuffle(channels=C, groups=groups)
    out = jax.block_until_ready(module(x))
    ref = channel_shuffle_ref(x, groups)
    assert out.shape == (B, C, H, W)
    assert out.dtype == x.dtype
    assert jnp.array_equal(out, ref), "fast-path channel shuffle mismatch vs reference"

    # Secondary check — contiguous fallback (7x7 map: H*W = 49, not 128-aligned).
    B2, C2, H2, W2, g2 = 2, 8, 7, 7, 4
    x2 = jax.random.normal(jax.random.PRNGKey(0), (B2, C2, H2, W2), dtype=jnp.float32)
    out2 = jax.block_until_ready(ChannelShuffle(C2, g2)(x2))
    assert jnp.array_equal(out2, channel_shuffle_ref(x2, g2)), (
        "fallback channel shuffle mismatch vs reference"
    )

    print("KERNEL_OK")
</pallas_src>

<mosaic_0001>
module attributes {stable_mosaic.version = 11 : i64} {
  func.func @_copy_kernel(%arg0: i32, %arg1: i32, %arg2: i32, %arg3: memref<1x1x2x256xf32, #tpu.memory_space<vmem>>, %arg4: memref<1x2x256xf32, #tpu.memory_space<vmem>>) attributes {dimension_semantics = [#tpu.dimension_semantics<parallel>, #tpu.dimension_semantics<parallel>, #tpu.dimension_semantics<parallel>], iteration_bounds = array<i64: 2, 2, 1>, scalar_prefetch = 0 : i64, scratch_operands = 0 : i64, tpu.core_type = #tpu.core_type<tc>, window_params = [{transform_indices = @transform_0, window_bounds = array<i64: 1, 1, 2, 256>}, {transform_indices = @transform_1, window_bounds = array<i64: 1, 2, 256>}]} {
    %c0 = arith.constant 0 : index
    %c0_0 = arith.constant 0 : index
    %c0_1 = arith.constant 0 : index
    %c0_2 = arith.constant 0 : index
    %0 = vector.load %arg3[%c0, %c0_0, %c0_1, %c0_2] : memref<1x1x2x256xf32, #tpu.memory_space<vmem>>, vector<1x1x2x256xf32>
    %1 = vector.shape_cast %0 : vector<1x1x2x256xf32> to vector<1x2x256xf32>
    %c0_3 = arith.constant 0 : index
    %c0_4 = arith.constant 0 : index
    %c0_5 = arith.constant 0 : index
    %2 = vector.load %arg4[%c0_3, %c0_4, %c0_5] : memref<1x2x256xf32, #tpu.memory_space<vmem>>, vector<1x2x256xf32>
    tpu.vector_store %arg4[%c0_3, %c0_4, %c0_5], %1 {strides = array<i32>} : memref<1x2x256xf32, #tpu.memory_space<vmem>>, vector<1x2x256xf32>,
    return
  }
  func.func @transform_0(%arg0: i32, %arg1: i32, %arg2: i32) -> (i32, i32, i32, i32) {
    %c0_i32 = arith.constant 0 : i32
    %c0_i32_0 = arith.constant 0 : i32
    return %arg0, %arg1, %c0_i32, %arg2 : i32, i32, i32, i32
  }
  func.func @transform_1(%arg0: i32, %arg1: i32, %arg2: i32) -> (i32, i32, i32) {
    %c1_i32 = arith.constant 1 : i32
    %0 = arith.muli %arg1, %c1_i32 : i32
    %1 = arith.addi %0, %arg2 : i32
    %c0_i32 = arith.constant 0 : i32
    %c0_i32_0 = arith.constant 0 : i32
    return %arg0, %c0_i32, %1 : i32, i32, i32
  }
}

</mosaic_0001>

<bundles_post_ra>
// kernel: tpu_custom_call.1
= control target key start
LH: loop header
LB: loop body
LE: loop exit
PB: predicated region body
PF: predicated region fallthrough
CT: control target
= control target key end

     0   :  { %6 = vsyncpa [#allocation3], 0  ;;  %s661_s0 = inlined_call_operand.hbm [shape: f32[2,2,2,256], index: 0, kind: input, shape index: {}]   ;;  %s662_s1 = inlined_call_operand.hbm [shape: f32[2,2,512], index: 1, kind: output, shape index: {}]  }
   0x1   :  { %8 = vsyncpa [#allocation3 + $0x1], 0 }
   0x2   :  { %9 = vsyncpa [#allocation4], 0 }
   0x3   :  { %11 = vsyncpa [#allocation4 + $0x1], 0  ;;  %s519_s6 = smov 0   ;;  %s521_s7 = smov 0  }
   0x4   :  { %s523_s8 = smov 0   ;;  %s525_s9 = smov 0  }
   0x5   :  { %s527_s10 = smov 0   ;;  %s529_s11 = smov 0  }
   0x6   :  { %s531_s12 = smov 0   ;;  %s533_s13 = smov 0  }
   0x7 LB: > { %s284_s14 = sadd.s32 4294967295, %s507_s13   ;;  %s285_s15 = sadd.s32 4294967294, %s507_s13   ;;  %s507_s13 = sphi %s533_s13, %s17_s13   ;;  %s503_s12 = sphi %s531_s12, %s673_s12   ;;  %s499_s11 = sphi %s529_s11, %s672_s11   ;;  %s495_s10 = sphi %s527_s10, %s671_s10   ;;  %s491_s9 = sphi %s525_s9, %s670_s9   ;;  %s487_s8 = sphi %s523_s8, %s669_s8   ;;  %s483_s7 = sphi %s521_s7, %s668_s7   ;;  %s479_s6 = sphi %s519_s6, %s667_s6  }
   0x8   : > { %s32_s16 = sadd.s32 1, %s499_s11  ;;  %s36_s17 = sadd.s32 1, %s503_s12 }
   0x9   : > { %p34_p0 = scmp.ge.s32.totalorder %s32_s16, 2  ;;  %s47_s18 = sadd.s32 1, %s487_s8 }
   0xa   : > { %p54_p1 = scmp.ne.s32.totalorder %s487_s8, %s483_s7  ;;  %p55_p2 = scmp.eq.s32.totalorder %s507_s13, 0 }
   0xb   : > { %s675_s16 = smov (%p34_p0, %s32_s16), 0  ;;  %s677_s17 = smov (!%p34_p0, %s36_s17), %s503_s12 }
   0xc   : > { %s41_s19 = ssub.s32 %s499_s11, %s675_s16  ;;  %p572_p3 = por %p55_p2, %p54_p1 }
   0xd   : > { %p38_p4 = scmp.ge.s32.totalorder %s677_s17, 2  ;;  %p60_p5 = scmp.ne.s32.totalorder %s483_s7, %s479_s6 }
   0xe   : > { %p61_p6 = scmp.eq.s32.totalorder %s284_s14, 0  ;;  %p88_p7 = scmp.eq.s32.totalorder %s284_s14, 3 }
   0xf   : > { %s679_s17 = smov (%p38_p4, %s677_s17), 0  ;;  %p94_p10 = scmp.eq.s32.totalorder %s285_s15, 3 }
  0x10   : > { %p580_p8 = por %p61_p6, %p60_p5  ;;  %p584_p9 = por %p88_p7, %p54_p1 }
  0x11   : > { %s40_s23 = ssub.s32 %s503_s12, %s679_s17  ;;  %p590_p12 = por %p94_p10, %p60_p5 }
  0x12   : > { %s42_s24 = sor.u32 %s41_s19, %s40_s23  ;;  %p313_p13 = scmp.lt.s32.totalorder %s507_s13, 4 }
  0x13   : > { %p45_p11 = scmp.eq.s32.totalorder %s42_s24, 0  ;;  %s114_s26 = sand.u32 1, %s487_s8  }
  0x14   : > { %s288_s28 = sshll.u32 %s114_s26, 2  ;;  %s289_s29 = sshll.u32 %s499_s11, 1 }
  0x15   : > { %s597_s27 = scalar_select %p45_p11, %s487_s8, %s47_s18  }
  0x16   : > { %s290_s30 = sshll.u32 %s503_s12, 2  ;;  %s118_s2 = scalar_lea.vmem [#allocation2], %s288_s28 }
  0x17   : > { %s131_s3 = sshll.u32 %s118_s2, 4  ;;  %s125_s4 = sadd.s32 %s290_s30, %s289_s29  ;;  %s132_s3 = int_to_ptr.vmem [resolvable:$true] %s131_s3 }
  0x18   : > { %s291_s5 = sshll.u32 %s125_s4, 1  ;;  %p306_p0 = pnand %p313_p13, %p572_p3 }
  0x19   : > { %s127_s19 = scalar_lea.hbm %s661_s0, %s291_s5  ;;  %p292_p1 = scmp.ge.s32.totalorder %s507_s13, 1 }
  0x1a   : > { %s129_s23 = sshll.u32 %s127_s19, 4  ;;  %p136_p2 = scmp.lt.s32.totalorder %s507_s13, 5  ;;  %s130_s23 = int_to_ptr.hbm [resolvable:$true] %s129_s23 }
  0x1b   : > { %s115_s18 = scalar_lea.sflag [#allocation3], %s114_s26 }
  0x1c   : > { %308 = dma.hbm_to_vmem [thread:$0]  (!%p306_p0), %s130_s23, 64, %s132_s3, %s115_s18  }
  0x1d   : > { %p137_p4 = pnand %p292_p1, %p136_p2 }
  0x1e   : > { %s609_s24 = sand.u32 (!%p137_p4), 1, %s483_s7  }
  0x1f   : > { %140 = sbr.rel (%p137_p4) target bundleno = 54 (0x36), region = 24  ;;  %s293_s20 = sshll.u32 (!%p137_p4), %s609_s24, 2 }
  0x20   : > { %s143_s28 = scalar_lea.sflag (!%p137_p4), [#allocation3], %s609_s24  ;;  %s146_s29 = scalar_lea.vmem (!%p137_p4), [#allocation2], %s293_s20 }
  0x24   : > { %470 = dma.done.wait (%p580_p8), %s143_s28, 64  }
  0x25   : > { %472 = vsyncadd (%p580_p8), %s143_s28, 4294967232  ;;  %s296_s26 = sshll.u32 %s491_s9, 1  ;;  %s297_s30 = sshll.u32 %s495_s10, 2  ;;  %v169_v0 = vld [vmem:[%s146_s29] sm:$0xf] }
  0x26   : > { %s165_s2 = scalar_lea.vmem [#allocation5], %s293_s20  ;;  %s184_s4 = sadd.s32 %s297_s30, %s296_s26 }
  0x27   : > { %s188_s3 = sshll.u32 %s165_s2, 4  ;;  %s298_s5 = sshll.u32 %s184_s4, 1  ;;  %170 = vst [vmem:[%s165_s2] sm:$0xf] %v169_v0  ;;  %s189_s3 = int_to_ptr.vmem [resolvable:$true] %s188_s3 }
  0x28   : > { %s186_s19 = scalar_lea.hbm %s662_s1, %s298_s5  ;;  %s172_s21 = scalar_lea.sflag [#allocation4], %s609_s24 }
  0x29   : > { %s190_s23 = sshll.u32 %s186_s19, 4  ;;  %s429_s20 = scalar_lea.hbm %s662_s1, 16  ;;  %s191_s23 = int_to_ptr.hbm [resolvable:$true] %s190_s23 }
  0x2a   : > { %s423_s18 = sshra.s32 %s191_s23, 4  ;;  %s424_s18 = int_to_ptr.hbm [resolvable:$true] %s423_s18 }
  0x2b   : > { %s425_s28 = scalar_lea.hbm %s424_s18, 4  ;;  %p430_p7 = scmp.lt.s32.totalorder %s424_s18, %s662_s1 }
  0x2c   : > { %p426_p3 = scmp.ne.s32.totalorder %s424_s18, %s425_s28  ;;  %p431_p8 = scmp.lt.s32.totalorder %s429_s20, %s425_s28 }
  0x2e   : > { %p427_p5 = pnand %p426_p3, %p584_p9  ;;  %p432_p10 = por %p431_p8, %p430_p7 }
  0x30   : > { %p428_p6 = pneg %p427_p5 }
  0x32   : > { %p433_p11 = pnand %p432_p10, %p428_p6 }
  0x34   : > { %436 = shalt.err (!%p433_p11)
}
  0x35   : > { %303 = dma.vmem_to_hbm [thread:$0]  (%p584_p9), %s189_s3, 64, %s191_s23, %s172_s21  }
  0x36 PF: > { %p314_p13 = scmp.ge.s32.totalorder %s507_s13, 2  ;;  %s202_s24 = sand.u32 1, %s479_s6  }
  0x37   : > { %s203_s29 = scalar_lea.sflag [#allocation4], %s202_s24 }
  0x38   : > { %p310_p0 = pnand %p314_p13, %p590_p12 }
  0x3a   : > { %p311_p1 = pneg %p310_p0 }
  0x3c   : > { %474 = dma.done.wait (%p311_p1), %s203_s29, 64  }
  0x3d   : > { %476 = vsyncadd (%p311_p1), %s203_s29, 4294967232  ;;  %s17_s13 = sadd.s32 1, %s507_s13   ;;  %s667_s6 = smov %s483_s7 }
  0x3e   : > { %p14_p2 = scmp.ge.s32.totalorder %s17_s13, 6   ;;  %s668_s7 = smov %s487_s8 }
  0x3f   : > { %s669_s8 = smov %s597_s27  ;;  %s670_s9 = smov %s499_s11 }
  0x40   : > { %s671_s10 = smov %s503_s12  ;;  %s672_s11 = smov %s675_s16 }
  0x41   : > { %s673_s12 = smov %s679_s17  ;;  %16 = sbr.rel (!%p14_p2) target bundleno = 7 (0x7), region = 69 }
  0x46   :  { %209 = vsyncpa [#allocation3], 1 }
  0x47   :  { %211 = vsyncpa [#allocation3 + $0x1], 1 }
  0x48   :  { %212 = vsyncpa [#allocation4], 1 }
  0x49   :  { %214 = vsyncpa [#allocation4 + $0x1], 1 }

</bundles_post_ra>
